<compile_context>
chip_gen: v7x
topology: tpu7x:2x2x1
jax: 0.10.0
libtpu: 0.0.40
codegen_flags: <defaults>
</compile_context>

<pallas_src>
import functools

import jax
import jax.numpy as jnp
from jax.experimental import pallas as pl
from jax.experimental.pallas import tpu as pltpu

HIDDEN = 16                       # logical hidden width of the module
LANE = 128                        # TPU lane width
_VMEM_LIMIT = 32 * 1024 * 1024    # raise v5e's 16 MiB default; safe on all gens
_VMEM_BUDGET = 24 * 1024 * 1024   # headroom under the limit when sizing tiles
_TB_CAP = 4096                    # absolute batch-tile cap


def _policy_kernel(x_ref, w1_ref, wh_ref, b_ref, out_ref, *, action_size):
    # Per grid step:
    #   x_ref:   (TB, S)       unpadded input rows
    #   w1_ref:  (S, HP)       layer-1 weight, columns zero-padded to HP
    #   wh_ref:  (3, HP, HP)   layers 2-4 weights, zero-padded
    #   b_ref:   (4, 1, HP)    biases, zero-padded
    #   out_ref: (TB, A)       softmax probabilities (unpadded)
    f32 = jnp.float32

    # Layer 1: Linear + ReLU.  K = true state width; zero-padded weight
    # columns keep lanes >= HIDDEN of h identically zero.
    h = jnp.maximum(
        jnp.dot(x_ref[...], w1_ref[...], preferred_element_type=f32) + b_ref[0],
        0.0)

    # Layers 2-3: Linear + ReLU (lane-dense 128-wide MXU matmuls, f32 acc).
    for l in range(2):
        h = jnp.maximum(
            jnp.dot(h, wh_ref[l], preferred_element_type=f32) + b_ref[l + 1],
            0.0)

    # Layer 4: logits; padded lanes masked to -inf so their exp is exactly 0.
    logits = jnp.dot(h, wh_ref[2], preferred_element_type=f32) + b_ref[3]
    lane = jax.lax.broadcasted_iota(jnp.int32, logits.shape, 1)
    logits = jnp.where(lane < action_size, logits, -jnp.inf)

    # Numerically stable softmax over the action axis.
    m = jnp.max(logits, axis=1, keepdims=True)
    e = jnp.exp(logits - m)
    denom = jnp.sum(e, axis=1, keepdims=True)

    # EUP approximate reciprocal + one Newton step (~f32 accurate); keeps the
    # divide off the VPU.
    r = pl.reciprocal(denom, approx=True)
    r = r * (2.0 - denom * r)

    # Only the real action lanes are written back (narrow masked store beats
    # a 128-lane padded writeback + wrapper slice for a mem-bound kernel).
    out_ref[...] = (e * r)[:, :action_size].astype(out_ref.dtype)


def _pick_batch_tile(batch, cap):
    """Largest multiple-of-8 divisor of batch <= min(cap, batch//2).

    Guarantees >= 2 grid steps whenever the batch can be split (so the
    'parallel' grid axis can shard across v7x's two TensorCores); falls back
    to a single full-batch block otherwise.
    """
    limit = min(cap, batch // 2)
    tb = (limit // 8) * 8
    while tb >= 8:
        if batch % tb == 0:
            return tb
        tb -= 8
    return batch


def pack_policy_params(params):
    """Pack the 4 (w, b) pairs into three VMEM-resident operands.

    Call ONCE when params change (hoisted out of the per-step path).
    Returns (w1p, whp, bp, action_size) where
      w1p: (state_size, HP) f32, whp: (3, HP, HP) f32, bp: (4, 1, HP) f32.
    """
    state_size = params["w1"].shape[0]
    action_size = int(params["w4"].shape[1])
    hp = LANE * pl.cdiv(max(HIDDEN, action_size), LANE)

    w1p = jnp.zeros((state_size, hp), jnp.float32)
    w1p = w1p.at[:, :HIDDEN].set(params["w1"].astype(jnp.float32))

    whp = jnp.zeros((3, hp, hp), jnp.float32)
    for i, name in enumerate(("w2", "w3", "w4")):
        w = params[name].astype(jnp.float32)
        fi, fo = w.shape
        whp = whp.at[i, :fi, :fo].set(w)

    bp = jnp.zeros((4, 1, hp), jnp.float32)
    for i, name in enumerate(("b1", "b2", "b3", "b4")):
        b = params[name].astype(jnp.float32).reshape(-1)
        bp = bp.at[i, 0, :b.shape[0]].set(b)

    return w1p, whp, bp, action_size


def policy_forward(x, packed):
    """Run the Policy forward pass as a single Pallas TPU kernel.

    x:      (batch, state_size) array.
    packed: output of pack_policy_params(params).
    Returns (batch, action_size) softmax probabilities (float32).
    """
    w1p, whp, bp, action_size = packed
    batch, state_size = x.shape
    assert w1p.shape[0] == state_size, "packed params don't match x's state size"
    hp = whp.shape[-1]

    x = x.astype(jnp.float32)

    # Batch-tile selection: big tiles amortise the ~0.35us per-grid-step
    # overhead; bound by a VMEM budget (double-buffered I/O blocks, resident
    # weights, and ~6 live f32 (tb, HP) activation temporaries in the body).
    weight_bytes = 4 * (w1p.size + whp.size + bp.size)
    per_row_bytes = 2 * 4 * (state_size + action_size) + 6 * 4 * hp
    cap = max(8, min(_TB_CAP, (_VMEM_BUDGET - 2 * weight_bytes) // per_row_bytes))
    tb = _pick_batch_tile(batch, cap)
    grid = (pl.cdiv(batch, tb),)   # tb divides batch (or tb == batch)

    kernel = functools.partial(_policy_kernel, action_size=action_size)

    # Advisory cost estimate reflecting the padded work the kernel really does.
    flops = 2 * batch * (state_size * hp + 3 * hp * hp)
    cost = pl.CostEstimate(
        flops=flops,
        transcendentals=batch * hp,
        bytes_accessed=4 * (x.size + w1p.size + whp.size + bp.size
                            + batch * action_size))

    return pl.pallas_call(
        kernel,
        out_shape=jax.ShapeDtypeStruct((batch, action_size), jnp.float32),
        grid=grid,
        in_specs=[
            pl.BlockSpec((tb, state_size), lambda i: (i, 0)),   # x tile (unpadded)
            pl.BlockSpec((state_size, hp), lambda i: (0, 0)),   # w1   (resident)
            pl.BlockSpec((3, hp, hp), lambda i: (0, 0, 0)),     # w2..w4 (resident)
            pl.BlockSpec((4, 1, hp), lambda i: (0, 0, 0)),      # biases (resident)
        ],
        out_specs=pl.BlockSpec((tb, action_size), lambda i: (i, 0)),
        compiler_params=pltpu.CompilerParams(
            dimension_semantics=("parallel",),
            vmem_limit_bytes=_VMEM_LIMIT),
        cost_estimate=cost,
    )(x, w1p, whp, bp)


def init_params(key, state_size, action_size, hidden=HIDDEN):
    """Deterministic parameter init (shapes match the PyTorch module)."""
    ks = jax.random.split(key, 8)
    dims = [(state_size, hidden), (hidden, hidden), (hidden, hidden),
            (hidden, action_size)]
    params = {}
    for i, (fan_in, fan_out) in enumerate(dims, start=1):
        bound = 1.0 / jnp.sqrt(fan_in)   # PyTorch nn.Linear default-init bound
        params[f"w{i}"] = jax.random.uniform(
            ks[2 * (i - 1)], (fan_in, fan_out), jnp.float32, -bound, bound)
        params[f"b{i}"] = jax.random.uniform(
            ks[2 * (i - 1) + 1], (1, fan_out), jnp.float32, -bound, bound)
    return params


def _reference_forward(x, p):
    h = jnp.maximum(x @ p["w1"] + p["b1"], 0.0)
    h = jnp.maximum(h @ p["w2"] + p["b2"], 0.0)
    h = jnp.maximum(h @ p["w3"] + p["b3"], 0.0)
    logits = h @ p["w4"] + p["b4"]
    return jax.nn.softmax(logits, axis=1)


if __name__ == "__main__":
    key = jax.random.PRNGKey(0)
    k_x, k_p, k_x2 = jax.random.split(key, 3)

    batch, state_size, action_size = 8, 4, 4
    x = jax.random.normal(k_x, (batch, state_size), dtype=jnp.float32)
    params = init_params(k_p, state_size, action_size)

    packed = pack_policy_params(params)          # packed once, reused per step

    out = policy_forward(x, packed)
    out = jax.block_until_ready(out)
    ref = _reference_forward(x, params)
    assert out.shape == (batch, action_size)
    assert jnp.allclose(out, ref, atol=1e-5, rtol=1e-5)
    assert jnp.allclose(jnp.sum(out, axis=1), 1.0, atol=1e-5)

    # Exercise the multi-tile path (grid > 1, batch tiles on the parallel axis).
    x2 = jax.random.normal(k_x2, (64, state_size), dtype=jnp.float32)
    out2 = jax.block_until_ready(policy_forward(x2, packed))
    assert jnp.allclose(out2, _reference_forward(x2, params), atol=1e-5, rtol=1e-5)

    print("KERNEL_OK")
</pallas_src>

<mosaic_0001>
module attributes {stable_mosaic.version = 11 : i64} {
  func.func @_policy_kernel(%arg0: i32, %arg1: memref<8x4xf32, #tpu.memory_space<vmem>>, %arg2: memref<4x128xf32, #tpu.memory_space<vmem>>, %arg3: memref<3x128x128xf32, #tpu.memory_space<vmem>>, %arg4: memref<4x1x128xf32, #tpu.memory_space<vmem>>, %arg5: memref<8x4xf32, #tpu.memory_space<vmem>>) attributes {dimension_semantics = [#tpu.dimension_semantics<parallel>], iteration_bounds = array<i64: 1>, scalar_prefetch = 0 : i64, scratch_operands = 0 : i64, tpu.core_type = #tpu.core_type<tc>, window_params = [{transform_indices = @transform_0, window_bounds = array<i64: 8, 4>}, {pipeline_mode = #tpu.pipeline_mode<synchronous>, transform_indices = @transform_1, window_bounds = array<i64: 4, 128>}, {pipeline_mode = #tpu.pipeline_mode<synchronous>, transform_indices = @transform_2, window_bounds = array<i64: 3, 128, 128>}, {pipeline_mode = #tpu.pipeline_mode<synchronous>, transform_indices = @transform_3, window_bounds = array<i64: 4, 1, 128>}, {transform_indices = @transform_4, window_bounds = array<i64: 8, 4>}]} {
    %c0 = arith.constant 0 : index
    %c0_0 = arith.constant 0 : index
    %0 = vector.load %arg1[%c0, %c0_0] : memref<8x4xf32, #tpu.memory_space<vmem>>, vector<8x4xf32>
    %c0_1 = arith.constant 0 : index
    %c0_2 = arith.constant 0 : index
    %1 = vector.load %arg2[%c0_1, %c0_2] : memref<4x128xf32, #tpu.memory_space<vmem>>, vector<4x128xf32>
    %cst = arith.constant dense<0.000000e+00> : vector<8x128xf32>
    %2 = tpu.matmul %0, %1, %cst {dimension_numbers = #tpu.dot_dimension_numbers<[1], [0], [0], [1], [0, 0, 1, 1], [], []>} : vector<8x4xf32>, vector<4x128xf32>, vector<8x128xf32> -> vector<8x128xf32>
    %c0_3 = arith.constant 0 : index
    %c0_4 = arith.constant 0 : index
    %c0_5 = arith.constant 0 : index
    %3 = vector.load %arg4[%c0_3, %c0_4, %c0_5] : memref<4x1x128xf32, #tpu.memory_space<vmem>>, vector<1x1x128xf32>
    %4 = vector.shape_cast %3 : vector<1x1x128xf32> to vector<1x128xf32>
    %5 = vector.broadcast %4 : vector<1x128xf32> to vector<8x128xf32>
    %6 = arith.addf %2, %5 : vector<8x128xf32>
    %cst_6 = arith.constant 0.000000e+00 : f32
    %7 = vector.broadcast %cst_6 : f32 to vector<8x128xf32>
    %8 = arith.maximumf %6, %7 : vector<8x128xf32>
    %c0_7 = arith.constant 0 : index
    %c0_8 = arith.constant 0 : index
    %c0_9 = arith.constant 0 : index
    %9 = vector.load %arg3[%c0_7, %c0_8, %c0_9] : memref<3x128x128xf32, #tpu.memory_space<vmem>>, vector<1x128x128xf32>
    %10 = vector.shape_cast %9 : vector<1x128x128xf32> to vector<128x128xf32>
    %cst_10 = arith.constant dense<0.000000e+00> : vector<8x128xf32>
    %11 = tpu.matmul %8, %10, %cst_10 {dimension_numbers = #tpu.dot_dimension_numbers<[1], [0], [0], [1], [0, 0, 1, 1], [], []>} : vector<8x128xf32>, vector<128x128xf32>, vector<8x128xf32> -> vector<8x128xf32>
    %c1 = arith.constant 1 : index
    %c0_11 = arith.constant 0 : index
    %c0_12 = arith.constant 0 : index
    %12 = vector.load %arg4[%c1, %c0_11, %c0_12] : memref<4x1x128xf32, #tpu.memory_space<vmem>>, vector<1x1x128xf32>
    %13 = vector.shape_cast %12 : vector<1x1x128xf32> to vector<1x128xf32>
    %14 = vector.broadcast %13 : vector<1x128xf32> to vector<8x128xf32>
    %15 = arith.addf %11, %14 : vector<8x128xf32>
    %cst_13 = arith.constant 0.000000e+00 : f32
    %16 = vector.broadcast %cst_13 : f32 to vector<8x128xf32>
    %17 = arith.maximumf %15, %16 : vector<8x128xf32>
    %c1_14 = arith.constant 1 : index
    %c0_15 = arith.constant 0 : index
    %c0_16 = arith.constant 0 : index
    %18 = vector.load %arg3[%c1_14, %c0_15, %c0_16] : memref<3x128x128xf32, #tpu.memory_space<vmem>>, vector<1x128x128xf32>
    %19 = vector.shape_cast %18 : vector<1x128x128xf32> to vector<128x128xf32>
    %cst_17 = arith.constant dense<0.000000e+00> : vector<8x128xf32>
    %20 = tpu.matmul %17, %19, %cst_17 {dimension_numbers = #tpu.dot_dimension_numbers<[1], [0], [0], [1], [0, 0, 1, 1], [], []>} : vector<8x128xf32>, vector<128x128xf32>, vector<8x128xf32> -> vector<8x128xf32>
    %c2 = arith.constant 2 : index
    %c0_18 = arith.constant 0 : index
    %c0_19 = arith.constant 0 : index
    %21 = vector.load %arg4[%c2, %c0_18, %c0_19] : memref<4x1x128xf32, #tpu.memory_space<vmem>>, vector<1x1x128xf32>
    %22 = vector.shape_cast %21 : vector<1x1x128xf32> to vector<1x128xf32>
    %23 = vector.broadcast %22 : vector<1x128xf32> to vector<8x128xf32>
    %24 = arith.addf %20, %23 : vector<8x128xf32>
    %cst_20 = arith.constant 0.000000e+00 : f32
    %25 = vector.broadcast %cst_20 : f32 to vector<8x128xf32>
    %26 = arith.maximumf %24, %25 : vector<8x128xf32>
    %c2_21 = arith.constant 2 : index
    %c0_22 = arith.constant 0 : index
    %c0_23 = arith.constant 0 : index
    %27 = vector.load %arg3[%c2_21, %c0_22, %c0_23] : memref<3x128x128xf32, #tpu.memory_space<vmem>>, vector<1x128x128xf32>
    %28 = vector.shape_cast %27 : vector<1x128x128xf32> to vector<128x128xf32>
    %cst_24 = arith.constant dense<0.000000e+00> : vector<8x128xf32>
    %29 = tpu.matmul %26, %28, %cst_24 {dimension_numbers = #tpu.dot_dimension_numbers<[1], [0], [0], [1], [0, 0, 1, 1], [], []>} : vector<8x128xf32>, vector<128x128xf32>, vector<8x128xf32> -> vector<8x128xf32>
    %c3 = arith.constant 3 : index
    %c0_25 = arith.constant 0 : index
    %c0_26 = arith.constant 0 : index
    %30 = vector.load %arg4[%c3, %c0_25, %c0_26] : memref<4x1x128xf32, #tpu.memory_space<vmem>>, vector<1x1x128xf32>
    %31 = vector.shape_cast %30 : vector<1x1x128xf32> to vector<1x128xf32>
    %32 = vector.broadcast %31 : vector<1x128xf32> to vector<8x128xf32>
    %33 = arith.addf %29, %32 : vector<8x128xf32>
    %34 = tpu.iota {dimensions = array<i32: 1>} : vector<8x128xi32>
    %c4_i32 = arith.constant 4 : i32
    %35 = vector.broadcast %c4_i32 : i32 to vector<8x128xi32>
    %36 = arith.cmpi slt, %34, %35 : vector<8x128xi32>
    %cst_27 = arith.constant 0xFF800000 : f32
    %37 = vector.broadcast %cst_27 : f32 to vector<8x128xf32>
    %38 = arith.select %36, %33, %37 : vector<8x128xi1>, vector<8x128xf32>
    %cst_28 = arith.constant dense<0xFF800000> : vector<8xf32>
    %39 = vector.multi_reduction <maximumf>, %38, %cst_28 [1] : vector<8x128xf32> to vector<8xf32>
    %40 = vector.shape_cast %39 : vector<8xf32> to vector<8x1xf32>
    %41 = vector.broadcast %40 : vector<8x1xf32> to vector<8x128xf32>
    %42 = arith.subf %38, %41 : vector<8x128xf32>
    %43 = math.exp %42 : vector<8x128xf32>
    %cst_29 = arith.constant dense<0.000000e+00> : vector<8xf32>
    %44 = vector.multi_reduction <add>, %43, %cst_29 [1] : vector<8x128xf32> to vector<8xf32>
    %45 = vector.shape_cast %44 : vector<8xf32> to vector<8x1xf32>
    %46 = tpu.reciprocal %45 {approx = true} : vector<8x1xf32> -> vector<8x1xf32>
    %47 = arith.mulf %45, %46 : vector<8x1xf32>
    %cst_30 = arith.constant 2.000000e+00 : f32
    %48 = vector.broadcast %cst_30 : f32 to vector<8x1xf32>
    %49 = arith.subf %48, %47 : vector<8x1xf32>
    %50 = arith.mulf %46, %49 : vector<8x1xf32>
    %51 = vector.broadcast %50 : vector<8x1xf32> to vector<8x128xf32>
    %52 = arith.mulf %43, %51 : vector<8x128xf32>
    %53 = vector.extract_strided_slice %52 {offsets = [0, 0], sizes = [8, 4], strides = [1, 1]} : vector<8x128xf32> to vector<8x4xf32>
    %c0_31 = arith.constant 0 : index
    %c0_32 = arith.constant 0 : index
    %54 = vector.load %arg5[%c0_31, %c0_32] : memref<8x4xf32, #tpu.memory_space<vmem>>, vector<8x4xf32>
    tpu.vector_store %arg5[%c0_31, %c0_32], %53 {strides = array<i32>} : memref<8x4xf32, #tpu.memory_space<vmem>>, vector<8x4xf32>,
    return
  }
  func.func @transform_0(%arg0: i32) -> (i32, i32) {
    %c0_i32 = arith.constant 0 : i32
    %c0_i32_0 = arith.constant 0 : i32
    return %arg0, %c0_i32 : i32, i32
  }
  func.func @transform_1(%arg0: i32) -> (i32, i32) {
    %c0_i32 = arith.constant 0 : i32
    %c0_i32_0 = arith.constant 0 : i32
    %c0_i32_1 = arith.constant 0 : i32
    return %c0_i32, %c0_i32_0 : i32, i32
  }
  func.func @transform_2(%arg0: i32) -> (i32, i32, i32) {
    %c0_i32 = arith.constant 0 : i32
    %c0_i32_0 = arith.constant 0 : i32
    %c0_i32_1 = arith.constant 0 : i32
    %c0_i32_2 = arith.constant 0 : i32
    return %c0_i32, %c0_i32_0, %c0_i32_1 : i32, i32, i32
  }
  func.func @transform_3(%arg0: i32) -> (i32, i32, i32) {
    %c0_i32 = arith.constant 0 : i32
    %c0_i32_0 = arith.constant 0 : i32
    %c0_i32_1 = arith.constant 0 : i32
    %c0_i32_2 = arith.constant 0 : i32
    return %c0_i32, %c0_i32_0, %c0_i32_1 : i32, i32, i32
  }
  func.func @transform_4(%arg0: i32) -> (i32, i32) {
    %c0_i32 = arith.constant 0 : i32
    %c0_i32_0 = arith.constant 0 : i32
    return %arg0, %c0_i32 : i32, i32
  }
}

</mosaic_0001>

<bundles_post_ra>
// kernel: tpu_custom_call.1
= control target key start
LH: loop header
LB: loop body
LE: loop exit
PB: predicated region body
PF: predicated region fallthrough
CT: control target
= control target key end

     0   :  { %9 = vsyncpa [#allocation3], 0  ;;  %s705_s15 = smov [#allocation2]   ;;  %s804_s0 = inlined_call_operand.vmem [shape: f32[8,4], index: 0, kind: input, shape index: {}]   ;;  %s805_s1 = inlined_call_operand.vmem [shape: f32[4,128], index: 1, kind: input, shape index: {}]   ;;  %s806_s2 = inlined_call_operand.hbm [shape: f32[3,128,128], index: 2, kind: input, shape index: {}]   ;;  %s807_s3 = inlined_call_operand.vmem [shape: f32[4,1,128], index: 3, kind: input, shape index: {}]   ;;  %s808_s4 = inlined_call_operand.vmem [shape: f32[8,4], index: 4, kind: output, shape index: {}]  }
   0x1   :  { %s19_s16 = sshll.u32 %s705_s15, 4  ;;  %s681_s19 = scalar_lea.hbm %s806_s2, 6144  ;;  %s20_s16 = int_to_ptr.vmem [resolvable:$true] %s19_s16 }
   0x2   :  { %p682_p0 = scmp.ne.s32.totalorder %s806_s2, %s681_s19  ;;  %p685_p1 = scmp.lt.u32.totalorder %s681_s19, %s806_s2 }
   0x4   :  { %p687_p2 = pnand %p685_p1, %p682_p0 }
   0x6   :  { %690 = shalt.err (!%p687_p2)
}
   0x7   :  { %s691_s24 = scalar_lea.vmem %s20_s16, 6144  ;;  %p696_p4 = scmp.lt.s32.totalorder %s20_s16, %s20_s16 }
   0x8   :  { %p692_p3 = scmp.ne.s32.totalorder %s20_s16, %s691_s24  ;;  %p697_p5 = scmp.lt.s32.totalorder %s691_s24, %s691_s24 }
   0xa   :  { %p698_p6 = por %p697_p5, %p696_p4 }
   0xc   :  { %p699_p7 = pnand %p698_p6, %p692_p3 }
   0xe   :  { %702 = shalt.err (!%p699_p7)
}
   0xf   :  { %s706_s25 = smov 128   ;;  %s707_s26 = smov 8  }
  0x10   :  { %25 = dma.hbm_to_vmem [thread:$0]  %s806_s2, 6144, %s20_s16, [#allocation3], %s706_s25, %s706_s25, %s707_s26  }
  0x11   :  { %703 = dma.done.wait [#allocation3], 6144  }
  0x12   :  { %704 = vsyncadd [#allocation3], 4294961152  ;;  %v708_v0 = vmov 0.0   ;;  %vm709_vm0 = vmmov 0   ;;  %v710_v1 = vmov 0.0|0.0   ;;  %vm44_vm1 = vcmask 1043456  }
  0x13   :  { %489 = vmatprep.subr.mxu0 %v708_v0  ;;  %491 = vmatprep.mubr.msk.f32.mxu0 %vm709_vm0, %v708_v0  ;;  %vm40_vm2 = vcmask 31744   ;;  %v32_v2 = vld [vmem:[%s805_s1] sm:$0xf]  ;;  %v120_v5 = vld [vmem:[#allocation2 + $0x8] sm:$0xff]  ;;  %v121_v6 = vld [vmem:[#allocation2 + $0x10] sm:$0xff] }
  0x14   :  { %599 = vmatprep.subr.bf16.mxu1 %v710_v1  ;;  %526 = vmatprep.mubr.msk.f32.mxu1 %vm709_vm0, %v708_v0  ;;  %v31_v3 = vld [vmem:[%s804_s0] sm:$0xff]  ;;  %v122_v7 = vld [vmem:[#allocation2 + $0x18] sm:$0xff]  ;;  %v124_v11 = vld [vmem:[#allocation2 + $0x28] sm:$0xff] }
  0x15   :  { %v119_v4 = vld [vmem:[#allocation2] sm:$0xff]  ;;  %490 = vmatpush3.msk.msra.mxu0 %vm44_vm1, %v32_v2  ;;  %v603_v9 = vpack.c.bf16 %v122_v7, %v121_v6  ;;  %v125_v13 = vld [vmem:[#allocation2 + $0x30] sm:$0xff]  ;;  %v126_v14 = vld [vmem:[#allocation2 + $0x38] sm:$0xff] }
  0x16   :  { %492 = vmatmul.mubr.msk.f32.vlgmr.msra.gmra.mrb[0].mxu0 %vm40_vm2, %v31_v3  ;;  %v600_v8 = vpack.c.bf16 %v120_v5, %v119_v4  ;;  %623 = vmatprep.subr.bf16.mxu0 %v710_v1  ;;  %v123_v10 = vld [vmem:[#allocation2 + $0x20] sm:$0xff]  ;;  %v609_v15 = vpack.c.bf16 %v126_v14, %v125_v13  ;;  %v128_v17 = vld [vmem:[#allocation2 + $0x48] sm:$0xff]  ;;  %v129_v19 = vld [vmem:[#allocation2 + $0x50] sm:$0xff] }
  0x17   :  { %561 = vmatprep.mubr.msk.f32.mxu0 %vm709_vm0, %v708_v0  ;;  %v606_v12 = vpack.c.bf16 %v124_v11, %v123_v10  ;;  %v127_v16 = vld [vmem:[#allocation2 + $0x40] sm:$0xff]  ;;  %v130_v20 = vld [vmem:[#allocation2 + $0x58] sm:$0xff]  ;;  %v132_v23 = vld [vmem:[#allocation2 + $0x68] sm:$0xff] }
  0x18   :  { %601 = vmatpush3.bf16.msra.mxu1 %v600_v8  ;;  %v612_v18 = vpack.c.bf16 %v128_v17, %v127_v16  ;;  %v615_v21 = vpack.c.bf16 %v130_v20, %v129_v19  ;;  %v131_v22 = vld [vmem:[#allocation2 + $0x60] sm:$0xff]  ;;  %v133_v25 = vld [vmem:[#allocation2 + $0x70] sm:$0xff]  ;;  %v134_v26 = vld [vmem:[#allocation2 + $0x78] sm:$0xff] }
  0x19   :  { %602 = vmatprep.subr.bf16.mxu1 %v710_v1  ;;  %v618_v24 = vpack.c.bf16 %v132_v23, %v131_v22  ;;  %v621_v27 = vpack.c.bf16 %v134_v26, %v133_v25  ;;  %v215_v28 = vld [vmem:[#allocation2 + $0x80] sm:$0xff]  ;;  %v216_v29 = vld [vmem:[#allocation2 + $0x88] sm:$0xff]  ;;  %v217_v30 = vld [vmem:[#allocation2 + $0x90] sm:$0xff] }
  0x1a   :  { %v624_v31 = vpack.c.bf16 %v216_v29, %v215_v28  ;;  %v218_v32 = vld [vmem:[#allocation2 + $0x98] sm:$0xff]  ;;  %v219_v34 = vld [vmem:[#allocation2 + $0xa0] sm:$0xff]  ;;  %v220_v35 = vld [vmem:[#allocation2 + $0xa8] sm:$0xff] }
  0x1b   :  { %v627_v33 = vpack.c.bf16 %v218_v32, %v217_v30  ;;  %v630_v36 = vpack.c.bf16 %v220_v35, %v219_v34  ;;  %v221_v37 = vld [vmem:[#allocation2 + $0xb0] sm:$0xff]  ;;  %v222_v38 = vld [vmem:[#allocation2 + $0xb8] sm:$0xff]  ;;  %v223_v40 = vld [vmem:[#allocation2 + $0xc0] sm:$0xff] }
  0x1c   :  { %604 = vmatpush3.bf16.msra.mxu1 %v603_v9  ;;  %625 = vmatpush3.bf16.msra.mxu0 %v624_v31  ;;  %v633_v39 = vpack.c.bf16 %v222_v38, %v221_v37  ;;  %v224_v41 = vld [vmem:[#allocation2 + $0xc8] sm:$0xff]  ;;  %v225_v43 = vld [vmem:[#allocation2 + $0xd0] sm:$0xff]  ;;  %v226_v44 = vld [vmem:[#allocation2 + $0xd8] sm:$0xff] }
  0x1d   :  { %605 = vmatprep.subr.bf16.mxu1 %v710_v1  ;;  %626 = vmatprep.subr.bf16.mxu0 %v710_v1  ;;  %v636_v42 = vpack.c.bf16 %v224_v41, %v223_v40  ;;  %v639_v45 = vpack.c.bf16 %v226_v44, %v225_v43  ;;  %v227_v46 = vld [vmem:[#allocation2 + $0xe0] sm:$0xff]  ;;  %v228_v47 = vld [vmem:[#allocation2 + $0xe8] sm:$0xff]  ;;  %v229_v54 = vld [vmem:[#allocation2 + $0xf0] sm:$0xff] }
  0x1e   :  { %v642_v48 = vpack.c.bf16 %v228_v47, %v227_v46  ;;  %v427_v49 = vld [vmem:[%s807_s3] ss:$0 sm:$0xff]  ;;  %v230_v55 = vld [vmem:[#allocation2 + $0xf8] sm:$0xff]  ;;  %v312_v58 = vld [vmem:[#allocation2 + $0x108] sm:$0xff] }
  0x1f   :  { %v645_v56 = vpack.c.bf16 %v230_v55, %v229_v54  ;;  %v311_v57 = vld [vmem:[#allocation2 + $0x100] sm:$0xff]  ;;  %v313_v59 = vld [vmem:[#allocation2 + $0x110] sm:$0xff]  ;;  %v314_v61 = vld [vmem:[#allocation2 + $0x118] sm:$0xff] }
  0x20   :  { %607 = vmatpush3.bf16.msra.mxu1 %v606_v12  ;;  %628 = vmatpush3.bf16.msra.mxu0 %v627_v33  ;;  %v648_v60 = vpack.c.bf16 %v312_v58, %v311_v57  ;;  %v651_v62 = vpack.c.bf16 %v314_v61, %v313_v59  ;;  %v315_v63 = vld [vmem:[#allocation2 + $0x120] sm:$0xff]  ;;  %v316_v2 = vld [vmem:[#allocation2 + $0x128] sm:$0xff]  ;;  %v318_v4 = vld [vmem:[#allocation2 + $0x138] sm:$0xff] }
  0x21   :  { %608 = vmatprep.subr.bf16.mxu1 %v710_v1  ;;  %629 = vmatprep.subr.bf16.mxu0 %v710_v1  ;;  %v654_v3 = vpack.c.bf16 %v316_v2, %v315_v63  ;;  %v319_v6 = vld [vmem:[#allocation2 + $0x140] sm:$0xff]  ;;  %v320_v7 = vld [vmem:[#allocation2 + $0x148] sm:$0xff]  ;;  %v321_v9 = vld [vmem:[#allocation2 + $0x150] sm:$0xff] }
  0x22   :  { %v660_v8 = vpack.c.bf16 %v320_v7, %v319_v6  ;;  %v322_v10 = vld [vmem:[#allocation2 + $0x158] sm:$0xff]  ;;  %v323_v12 = vld [vmem:[#allocation2 + $0x160] sm:$0xff]  ;;  %v324_v13 = vld [vmem:[#allocation2 + $0x168] sm:$0xff] }
  0x23   :  { %v663_v11 = vpack.c.bf16 %v322_v10, %v321_v9  ;;  %v666_v14 = vpack.c.bf16 %v324_v13, %v323_v12  ;;  %v325_v20 = vld [vmem:[#allocation2 + $0x170] sm:$0xff]  ;;  %v433_v23 = vld [vmem:[%s807_s3 + $0x2] ss:$0 sm:$0xff]  ;;  %v435_v29 = vld [vmem:[%s807_s3 + $0x3] ss:$0 sm:$0xff] }
  0x24   :  { %610 = vmatpush3.bf16.msra.mxu1 %v609_v15  ;;  %631 = vmatpush3.bf16.msra.mxu0 %v630_v36  ;;  %v431_v15 = vld [vmem:[%s807_s3 + $0x1] ss:$0 sm:$0xff] }
  0x25   :  { %611 = vmatprep.subr.bf16.mxu1 %v710_v1  ;;  %632 = vmatprep.subr.bf16.mxu0 %v710_v1 }
  0x28   :  { %613 = vmatpush3.bf16.msra.mxu1 %v612_v18  ;;  %634 = vmatpush3.bf16.msra.mxu0 %v633_v39 }
  0x29   :  { %614 = vmatprep.subr.bf16.mxu1 %v710_v1  ;;  %635 = vmatprep.subr.bf16.mxu0 %v710_v1 }
  0x2c   :  { %616 = vmatpush3.bf16.msra.mxu1 %v615_v21  ;;  %637 = vmatpush3.bf16.msra.mxu0 %v636_v42  ;;  %v326_v21 = vld [vmem:[#allocation2 + $0x178] sm:$0xff] }
  0x2d   :  { %617 = vmatprep.subr.bf16.mxu1 %v710_v1  ;;  %638 = vmatprep.subr.bf16.mxu0 %v710_v1  ;;  %v669_v22 = vpack.c.bf16 %v326_v21, %v325_v20 }
  0x30   :  { %619 = vmatpush3.bf16.msra.mxu1 %v618_v24  ;;  %640 = vmatpush3.bf16.msra.mxu0 %v639_v45 }
  0x31   :  { %620 = vmatprep.subr.bf16.mxu1 %v710_v1  ;;  %641 = vmatprep.subr.bf16.mxu0 %v710_v1 }
  0x34   :  { %622 = vmatpush3.bf16.msra.mxu1 %v621_v27  ;;  %643 = vmatpush3.bf16.msra.mxu0 %v642_v48  ;;  %v405_v27 = vlaneseq }
  0x35   :  { %647 = vmatprep.subr.bf16.mxu1 %v710_v1  ;;  %644 = vmatprep.subr.bf16.mxu0 %v710_v1 }
  0x36   :  { %v406_v28 = vand.u32 127, %v405_v27 }
  0x38   :  { %646 = vmatpush3.bf16.msra.mxu0 %v645_v56  ;;  %vm407_vm3 = vcmp.lt.s32.totalorder %v406_v28, 4 }
  0xe9   :  { %v114_v50 = vpop.f32.mrb[0].mxu0 }
  0xea   :  { %v115_v51 = vadd.f32 %v427_v49, %v114_v50  ;;  %v493_v52 = vpop.f32.mrb[1].mxu0 }
  0xec   :  { %v118_v53 = vmax.f32 %v115_v51, 0.0 }
  0xee   :  { %527 = vmatmul.mubr.f32.vlgmr.msra.gmra.mrb[0].mxu1 %v118_v53 }
  0xef   :  { %596 = vmatprep.mubr.msk.f32.mxu1 %vm709_vm0, %v708_v0  ;;  %649 = vmatpush3.bf16.msra.mxu1 %v648_v60  ;;  %v317_v0 = vld [vmem:[#allocation2 + $0x130] sm:$0xff] }
  0xf0   :  { %650 = vmatprep.subr.bf16.mxu1 %v710_v1  ;;  %v657_v5 = vpack.c.bf16 %v318_v4, %v317_v0 }
  0xf3   :  { %652 = vmatpush3.bf16.msra.mxu1 %v651_v62 }
  0xf4   :  { %653 = vmatprep.subr.bf16.mxu1 %v710_v1 }
  0xf7   :  { %655 = vmatpush3.bf16.msra.mxu1 %v654_v3 }
  0xf8   :  { %656 = vmatprep.subr.bf16.mxu1 %v710_v1 }
  0xfb   :  { %658 = vmatpush3.bf16.msra.mxu1 %v657_v5 }
  0xfc   :  { %659 = vmatprep.subr.bf16.mxu1 %v710_v1 }
  0xff   :  { %661 = vmatpush3.bf16.msra.mxu1 %v660_v8 }
 0x100   :  { %662 = vmatprep.subr.bf16.mxu1 %v710_v1 }
 0x103   :  { %664 = vmatpush3.bf16.msra.mxu1 %v663_v11 }
 0x104   :  { %665 = vmatprep.subr.bf16.mxu1 %v710_v1 }
 0x107   :  { %667 = vmatpush3.bf16.msra.mxu1 %v666_v14 }
 0x108   :  { %668 = vmatprep.subr.bf16.mxu1 %v710_v1 }
 0x10b   :  { %670 = vmatpush3.bf16.msra.mxu1 %v669_v22 }
 0x1c1   :  { %v209_v16 = vpop.f32.mrb[0].mxu1 }
 0x1c2   :  { %v210_v17 = vadd.f32 %v431_v15, %v209_v16  ;;  %v528_v18 = vpop.f32.mrb[1].mxu1 }
 0x1c4   :  { %v213_v19 = vmax.f32 %v210_v17, 0.0 }
 0x1c6   :  { %562 = vmatmul.mubr.f32.vlgmr.msra.gmra.mrb[2].mxu0 %v213_v19 }
 0x299   :  { %v305_v24 = vpop.f32.mrb[2].mxu0 }
 0x29a   :  { %v306_v25 = vadd.f32 %v433_v23, %v305_v24  ;;  %v563_v1 = vpop.f32.mrb[3].mxu0 }
 0x29c   :  { %v309_v26 = vmax.f32 %v306_v25, 0.0 }
 0x29e   :  { %597 = vmatmul.mubr.f32.vlgmr.msra.gmra.mrb[2].mxu1 %v309_v26 }
 0x371   :  { %v401_v30 = vpop.f32.mrb[2].mxu1 }
 0x372   :  { %v402_v31 = vadd.f32 %v435_v29, %v401_v30  ;;  %v598_v32 = vpop.f32.mrb[3].mxu1 }
 0x374   :  { %v408_v33 = vsel %vm407_vm3, %v402_v31, -inf }
 0x375   :  { %409 = vmax.xlane.f32.xlu0 %v408_v33 }
 0x402   :  { %v410_v34 = vpop.xlane.xlu0 %409 }
 0x403   :  { %v411_v35 = vsub.f32 %v408_v33, %v410_v34 }
 0x405   :  { %v412_v36 = vmul.f32 1.442695, %v411_v35 }
 0x407   :  { %677 = vpow2.f32 %v412_v36 }
 0x411   :  { %v678_v37 = vpop.eup %677 }
 0x412   :  { %414 = vadd.xlane.f32.xlu0 %v678_v37 }
 0x49f   :  { %v415_v38 = vpop.xlane.xlu0 %414 }
 0x4a0   :  { %679 = vrcp.f32 %v415_v38 }
 0x4aa   :  { %v680_v39 = vpop.eup %679 }
 0x4ab   :  { %v417_v40 = vmul.f32 %v680_v39, %v415_v38 }
 0x4ad   :  { %v418_v41 = vsub.f32 2.0, %v417_v40 }
 0x4af   :  { %v419_v42 = vmul.f32 %v680_v39, %v418_v41 }
 0x4b1   :  { %v420_v43 = vmul.f32 %v678_v37, %v419_v42 }
 0x4b3   :  { %421 = vst.msk [vmem:[%s808_s4] sm:$0xff] %vm40_vm2, %v420_v43 }
 0x4b4   :  { %426 = vsyncpa [#allocation3], 1 }

</bundles_post_ra>
